<compile_context>
chip_gen: v6e
topology: v6e:2x2x1
jax: 0.10.0
libtpu: 0.0.40
codegen_flags: <defaults>
</compile_context>

<pallas_src>
import math
from functools import partial

import jax
import jax.numpy as jnp
from jax import lax
from jax.experimental import pallas as pl
from jax.experimental.pallas import tpu as pltpu


def _fusion_kernel(fa_ref, fb_ref, w_ref, b_ref, out_ref, *, bn, c_a, c_b):
    """One batch block (bn samples) per grid step.

    fa_ref : (bn*C_a, D)  flattened modality-A features (compute dtype)
    fb_ref : (bn*C_b, D)  flattened modality-B features (compute dtype)
    w_ref  : (6, D, D)    [key_a, query_a*s, value_a, key_b, query_b*s, value_b], (in, out)
    b_ref  : (6, 1, D)    matching biases (query biases pre-scaled), float32
    out_ref: (bn, C_b + C_a, D) float32
    """
    mm_dtype = fa_ref.dtype  # matmul operand dtype (f32 or bf16)

    fa = fa_ref[...]
    fb = fb_ref[...]

    def proj(x, idx):
        # Single (rows, D) @ (D, D) MXU matmul over the whole batch block,
        # f32 accumulation + f32 bias add.
        return (jnp.dot(x, w_ref[idx], preferred_element_type=jnp.float32)
                + b_ref[idx].astype(jnp.float32))

    ka, qa, va = proj(fa, 0), proj(fa, 1), proj(fa, 2)   # (bn*C_a, D) f32
    kb, qb, vb = proj(fb, 3), proj(fb, 4), proj(fb, 5)   # (bn*C_b, D) f32

    def softmax_last(s):
        m = jnp.max(s, axis=-1, keepdims=True)
        e = jnp.exp(s - m)
        inv = pl.reciprocal(jnp.sum(e, axis=-1, keepdims=True), approx=True)
        return e * inv

    def attend(q, k, v):
        # softmax(q @ k^T) @ v ; the 1/sqrt(D) scale is pre-folded into the q weights.
        s = lax.dot_general(q.astype(mm_dtype), k.astype(mm_dtype),
                            dimension_numbers=(((1,), (1,)), ((), ())),
                            preferred_element_type=jnp.float32)
        p = softmax_last(s)
        return jnp.dot(p.astype(mm_dtype), v.astype(mm_dtype),
                       preferred_element_type=jnp.float32)

    # Per-sample attention: tiny (C, C) / (C, D) matmuls, static unrolled loop.
    for n in range(bn):
        sl_a = slice(n * c_a, (n + 1) * c_a)
        sl_b = slice(n * c_b, (n + 1) * c_b)
        fused_a = attend(qb[sl_b], ka[sl_a], va[sl_a])   # (C_b, D)
        fused_b = attend(qa[sl_a], kb[sl_b], vb[sl_b])   # (C_a, D)
        # torch.cat([fused_a, fused_b], dim=1) for this sample.
        out_ref[n, :c_b, :] = fused_a.astype(out_ref.dtype)
        out_ref[n, c_b:, :] = fused_b.astype(out_ref.dtype)


def _pick_block_batch(n, c_a, c_b, d, itemsize,
                      max_unrolled_batch=8, vmem_budget_bytes=8 << 20):
    """Largest batch block per grid step that keeps VMEM + unrolling bounded.

    Prefers a single grid step (whole batch).  When splitting, bn must divide N and
    the flattened row blocks (bn*C) must stay multiples of 8 sublanes so the
    BlockSpecs remain legal.
    """
    per_n = (c_a + c_b) * d * (itemsize + 8 * 4) + 2 * c_a * c_b * 4
    if n <= max_unrolled_batch and n * per_n <= vmem_budget_bytes:
        return n
    for bn in range(min(n, max_unrolled_batch), 0, -1):
        if n % bn:
            continue
        if (bn * c_a) % 8 or (bn * c_b) % 8:
            continue
        if bn * per_n <= vmem_budget_bytes:
            return bn
    return n  # fall back to one big step; always a legal blocking


def fusion_cross_attention(feature_a, feature_b, params, *, compute_dtype=jnp.float32):
    """feature_a: (N, 1, C_a, H, W), feature_b: (N, 1, C_b, H, W); dim_a = dim_b = H*W.

    params = (w_stack, b_stack):
      w_stack: (6, D, D) in (in, out) layout, order
               [key_a, query_a, value_a, key_b, query_b, value_b] (unscaled)
      b_stack: (6, 1, D)
    """
    N, _, C_a, H, W = feature_a.shape
    _, _, C_b, _, _ = feature_b.shape
    D = H * W
    C_total = C_b + C_a

    w_stack, b_stack = params

    # Fold the attention scale into the query projections (weights AND biases):
    #   attn_a uses QB / sqrt(dA), attn_b uses QA / sqrt(dB); here dA = dB = D.
    scale = jnp.asarray([1.0, 1.0 / math.sqrt(float(D)), 1.0,
                         1.0, 1.0 / math.sqrt(float(D)), 1.0], jnp.float32)
    w_scaled = (w_stack * scale[:, None, None]).astype(compute_dtype)
    b_scaled = (b_stack * scale[:, None, None]).astype(jnp.float32)

    # Batched row slabs: every projection becomes one (rows, D) @ (D, D) matmul.
    fa = feature_a.reshape(N * C_a, D).astype(compute_dtype)
    fb = feature_b.reshape(N * C_b, D).astype(compute_dtype)

    bn = _pick_block_batch(N, C_a, C_b, D, jnp.dtype(compute_dtype).itemsize)
    grid = (N // bn,)

    kernel = partial(_fusion_kernel, bn=bn, c_a=C_a, c_b=C_b)

    out = pl.pallas_call(
        kernel,
        out_shape=jax.ShapeDtypeStruct((N, C_total, D), jnp.float32),
        grid_spec=pltpu.PrefetchScalarGridSpec(
            num_scalar_prefetch=0,
            grid=grid,
            in_specs=[
                pl.BlockSpec((bn * C_a, D), lambda i: (i, 0)),
                pl.BlockSpec((bn * C_b, D), lambda i: (i, 0)),
                # Weights/biases: constant block index -> fetched once, reused.
                pl.BlockSpec((6, D, D), lambda i: (0, 0, 0)),
                pl.BlockSpec((6, 1, D), lambda i: (0, 0, 0)),
            ],
            out_specs=pl.BlockSpec((bn, C_total, D), lambda i: (i, 0, 0)),
        ),
        compiler_params=pltpu.CompilerParams(
            dimension_semantics=("parallel",),      # batch blocks are independent
            vmem_limit_bytes=32 * 1024 * 1024,
        ),
    )(fa, fb, w_scaled, b_scaled)

    # view(N, -1, H, W).unsqueeze(1)
    return out.reshape(N, 1, C_total, H, W)


def init_params(key, dim):
    """nn.Linear-style init (uniform(-1/sqrt(in), 1/sqrt(in))) for the six layers.

    Returns:
      params = (w_stack (6, D, D) (in, out), b_stack (6, 1, D))  -- kernel layout
      ws, bs  -- original (out, in) weights / (out,) biases for the plain-JAX reference
    """
    bound = 1.0 / math.sqrt(dim)
    keys = jax.random.split(key, 12)
    ws, bs = [], []
    for i in range(6):
        w = jax.random.uniform(keys[2 * i], (dim, dim), jnp.float32, -bound, bound)  # (out, in)
        b = jax.random.uniform(keys[2 * i + 1], (dim,), jnp.float32, -bound, bound)
        ws.append(w)
        bs.append(b)
    # order: key_a, query_a, value_a, key_b, query_b, value_b
    w_stack = jnp.stack([w.T for w in ws])        # (6, D, D) (in, out)
    b_stack = jnp.stack(bs).reshape(6, 1, dim)    # (6, 1, D)
    return (w_stack, b_stack), ws, bs


def reference(feature_a, feature_b, ws, bs):
    """Plain-JAX reimplementation of the PyTorch forward (y = x @ W.T + b)."""
    N, _, C_a, H, W = feature_a.shape
    _, _, C_b, _, _ = feature_b.shape
    D = H * W
    a = feature_a.reshape(N, C_a, D)
    b = feature_b.reshape(N, C_b, D)

    def lin(x, w, bias):
        return jnp.einsum('ncd,od->nco', x, w) + bias

    KA, QA, VA = (lin(a, ws[i], bs[i]) for i in range(3))
    KB, QB, VB = (lin(b, ws[3 + i], bs[3 + i]) for i in range(3))
    attn_a = jax.nn.softmax(jnp.einsum('nbd,nad->nba', QB, KA) / jnp.sqrt(jnp.float32(D)), axis=-1)
    fused_a = jnp.einsum('nba,nad->nbd', attn_a, VA)
    attn_b = jax.nn.softmax(jnp.einsum('nad,nbd->nab', QA, KB) / jnp.sqrt(jnp.float32(D)), axis=-1)
    fused_b = jnp.einsum('nab,nbd->nad', attn_b, VB)
    fab = jnp.concatenate([fused_a, fused_b], axis=1)
    return fab.reshape(N, 1, C_a + C_b, H, W)


if __name__ == "__main__":
    key = jax.random.PRNGKey(0)
    k_a, k_b, k_p = jax.random.split(key, 3)

    N, C_a, C_b, H, W = 2, 4, 6, 4, 4
    D = H * W  # dim_a == dim_b == H*W, as the PyTorch forward requires

    feature_a = jax.random.normal(k_a, (N, 1, C_a, H, W), jnp.float32)
    feature_b = jax.random.normal(k_b, (N, 1, C_b, H, W), jnp.float32)

    params, ws, bs = init_params(k_p, D)
    ref = reference(feature_a, feature_b, ws, bs)

    # f32 matmul path (matches module semantics; approx-reciprocal softmax).
    out = jax.block_until_ready(fusion_cross_attention(feature_a, feature_b, params))
    assert out.shape == (N, 1, C_a + C_b, H, W), out.shape
    assert jnp.allclose(out, ref, atol=5e-3, rtol=5e-3), float(jnp.max(jnp.abs(out - ref)))

    # bf16 MXU path (v6e/v7x fast path; f32 accumulation, f32 softmax).
    out_bf16 = jax.block_until_ready(
        fusion_cross_attention(feature_a, feature_b, params, compute_dtype=jnp.bfloat16))
    assert jnp.allclose(out_bf16, ref, atol=5e-2, rtol=5e-2), \
        float(jnp.max(jnp.abs(out_bf16 - ref)))

    print("KERNEL_OK")
</pallas_src>

<mosaic_0001>
module attributes {stable_mosaic.version = 11 : i64} {
  func.func @_fusion_kernel(%arg0: i32, %arg1: memref<8x16xf32, #tpu.memory_space<vmem>>, %arg2: memref<12x16xf32, #tpu.memory_space<vmem>>, %arg3: memref<6x16x16xf32, #tpu.memory_space<vmem>>, %arg4: memref<6x1x16xf32, #tpu.memory_space<vmem>>, %arg5: memref<2x10x16xf32, #tpu.memory_space<vmem>>) attributes {dimension_semantics = [#tpu.dimension_semantics<parallel>], iteration_bounds = array<i64: 1>, scalar_prefetch = 0 : i64, scratch_operands = 0 : i64, tpu.core_type = #tpu.core_type<tc>, window_params = [{transform_indices = @transform_0, window_bounds = array<i64: 8, 16>}, {transform_indices = @transform_1, window_bounds = array<i64: 12, 16>}, {pipeline_mode = #tpu.pipeline_mode<synchronous>, transform_indices = @transform_2, window_bounds = array<i64: 6, 16, 16>}, {pipeline_mode = #tpu.pipeline_mode<synchronous>, transform_indices = @transform_3, window_bounds = array<i64: 6, 1, 16>}, {transform_indices = @transform_4, window_bounds = array<i64: 2, 10, 16>}]} {
    %c0 = arith.constant 0 : index
    %c0_0 = arith.constant 0 : index
    %0 = vector.load %arg1[%c0, %c0_0] : memref<8x16xf32, #tpu.memory_space<vmem>>, vector<8x16xf32>
    %c0_1 = arith.constant 0 : index
    %c0_2 = arith.constant 0 : index
    %1 = vector.load %arg2[%c0_1, %c0_2] : memref<12x16xf32, #tpu.memory_space<vmem>>, vector<12x16xf32>
    %c0_3 = arith.constant 0 : index
    %c0_4 = arith.constant 0 : index
    %c0_5 = arith.constant 0 : index
    %2 = vector.load %arg3[%c0_3, %c0_4, %c0_5] : memref<6x16x16xf32, #tpu.memory_space<vmem>>, vector<1x16x16xf32>
    %3 = vector.shape_cast %2 : vector<1x16x16xf32> to vector<16x16xf32>
    %cst = arith.constant dense<0.000000e+00> : vector<8x16xf32>
    %4 = tpu.matmul %0, %3, %cst {dimension_numbers = #tpu.dot_dimension_numbers<[1], [0], [0], [1], [0, 0, 1, 1], [], []>} : vector<8x16xf32>, vector<16x16xf32>, vector<8x16xf32> -> vector<8x16xf32>
    %c0_6 = arith.constant 0 : index
    %c0_7 = arith.constant 0 : index
    %c0_8 = arith.constant 0 : index
    %5 = vector.load %arg4[%c0_6, %c0_7, %c0_8] : memref<6x1x16xf32, #tpu.memory_space<vmem>>, vector<1x1x16xf32>
    %6 = vector.shape_cast %5 : vector<1x1x16xf32> to vector<1x16xf32>
    %7 = vector.broadcast %6 : vector<1x16xf32> to vector<8x16xf32>
    %8 = arith.addf %4, %7 : vector<8x16xf32>
    %c1 = arith.constant 1 : index
    %c0_9 = arith.constant 0 : index
    %c0_10 = arith.constant 0 : index
    %9 = vector.load %arg3[%c1, %c0_9, %c0_10] : memref<6x16x16xf32, #tpu.memory_space<vmem>>, vector<1x16x16xf32>
    %10 = vector.shape_cast %9 : vector<1x16x16xf32> to vector<16x16xf32>
    %cst_11 = arith.constant dense<0.000000e+00> : vector<8x16xf32>
    %11 = tpu.matmul %0, %10, %cst_11 {dimension_numbers = #tpu.dot_dimension_numbers<[1], [0], [0], [1], [0, 0, 1, 1], [], []>} : vector<8x16xf32>, vector<16x16xf32>, vector<8x16xf32> -> vector<8x16xf32>
    %c1_12 = arith.constant 1 : index
    %c0_13 = arith.constant 0 : index
    %c0_14 = arith.constant 0 : index
    %12 = vector.load %arg4[%c1_12, %c0_13, %c0_14] : memref<6x1x16xf32, #tpu.memory_space<vmem>>, vector<1x1x16xf32>
    %13 = vector.shape_cast %12 : vector<1x1x16xf32> to vector<1x16xf32>
    %14 = vector.broadcast %13 : vector<1x16xf32> to vector<8x16xf32>
    %15 = arith.addf %11, %14 : vector<8x16xf32>
    %c2 = arith.constant 2 : index
    %c0_15 = arith.constant 0 : index
    %c0_16 = arith.constant 0 : index
    %16 = vector.load %arg3[%c2, %c0_15, %c0_16] : memref<6x16x16xf32, #tpu.memory_space<vmem>>, vector<1x16x16xf32>
    %17 = vector.shape_cast %16 : vector<1x16x16xf32> to vector<16x16xf32>
    %cst_17 = arith.constant dense<0.000000e+00> : vector<8x16xf32>
    %18 = tpu.matmul %0, %17, %cst_17 {dimension_numbers = #tpu.dot_dimension_numbers<[1], [0], [0], [1], [0, 0, 1, 1], [], []>} : vector<8x16xf32>, vector<16x16xf32>, vector<8x16xf32> -> vector<8x16xf32>
    %c2_18 = arith.constant 2 : index
    %c0_19 = arith.constant 0 : index
    %c0_20 = arith.constant 0 : index
    %19 = vector.load %arg4[%c2_18, %c0_19, %c0_20] : memref<6x1x16xf32, #tpu.memory_space<vmem>>, vector<1x1x16xf32>
    %20 = vector.shape_cast %19 : vector<1x1x16xf32> to vector<1x16xf32>
    %21 = vector.broadcast %20 : vector<1x16xf32> to vector<8x16xf32>
    %22 = arith.addf %18, %21 : vector<8x16xf32>
    %c3 = arith.constant 3 : index
    %c0_21 = arith.constant 0 : index
    %c0_22 = arith.constant 0 : index
    %23 = vector.load %arg3[%c3, %c0_21, %c0_22] : memref<6x16x16xf32, #tpu.memory_space<vmem>>, vector<1x16x16xf32>
    %24 = vector.shape_cast %23 : vector<1x16x16xf32> to vector<16x16xf32>
    %cst_23 = arith.constant dense<0.000000e+00> : vector<12x16xf32>
    %25 = tpu.matmul %1, %24, %cst_23 {dimension_numbers = #tpu.dot_dimension_numbers<[1], [0], [0], [1], [0, 0, 1, 1], [], []>} : vector<12x16xf32>, vector<16x16xf32>, vector<12x16xf32> -> vector<12x16xf32>
    %c3_24 = arith.constant 3 : index
    %c0_25 = arith.constant 0 : index
    %c0_26 = arith.constant 0 : index
    %26 = vector.load %arg4[%c3_24, %c0_25, %c0_26] : memref<6x1x16xf32, #tpu.memory_space<vmem>>, vector<1x1x16xf32>
    %27 = vector.shape_cast %26 : vector<1x1x16xf32> to vector<1x16xf32>
    %28 = vector.broadcast %27 : vector<1x16xf32> to vector<12x16xf32>
    %29 = arith.addf %25, %28 : vector<12x16xf32>
    %c4 = arith.constant 4 : index
    %c0_27 = arith.constant 0 : index
    %c0_28 = arith.constant 0 : index
    %30 = vector.load %arg3[%c4, %c0_27, %c0_28] : memref<6x16x16xf32, #tpu.memory_space<vmem>>, vector<1x16x16xf32>
    %31 = vector.shape_cast %30 : vector<1x16x16xf32> to vector<16x16xf32>
    %cst_29 = arith.constant dense<0.000000e+00> : vector<12x16xf32>
    %32 = tpu.matmul %1, %31, %cst_29 {dimension_numbers = #tpu.dot_dimension_numbers<[1], [0], [0], [1], [0, 0, 1, 1], [], []>} : vector<12x16xf32>, vector<16x16xf32>, vector<12x16xf32> -> vector<12x16xf32>
    %c4_30 = arith.constant 4 : index
    %c0_31 = arith.constant 0 : index
    %c0_32 = arith.constant 0 : index
    %33 = vector.load %arg4[%c4_30, %c0_31, %c0_32] : memref<6x1x16xf32, #tpu.memory_space<vmem>>, vector<1x1x16xf32>
    %34 = vector.shape_cast %33 : vector<1x1x16xf32> to vector<1x16xf32>
    %35 = vector.broadcast %34 : vector<1x16xf32> to vector<12x16xf32>
    %36 = arith.addf %32, %35 : vector<12x16xf32>
    %c5 = arith.constant 5 : index
    %c0_33 = arith.constant 0 : index
    %c0_34 = arith.constant 0 : index
    %37 = vector.load %arg3[%c5, %c0_33, %c0_34] : memref<6x16x16xf32, #tpu.memory_space<vmem>>, vector<1x16x16xf32>
    %38 = vector.shape_cast %37 : vector<1x16x16xf32> to vector<16x16xf32>
    %cst_35 = arith.constant dense<0.000000e+00> : vector<12x16xf32>
    %39 = tpu.matmul %1, %38, %cst_35 {dimension_numbers = #tpu.dot_dimension_numbers<[1], [0], [0], [1], [0, 0, 1, 1], [], []>} : vector<12x16xf32>, vector<16x16xf32>, vector<12x16xf32> -> vector<12x16xf32>
    %c5_36 = arith.constant 5 : index
    %c0_37 = arith.constant 0 : index
    %c0_38 = arith.constant 0 : index
    %40 = vector.load %arg4[%c5_36, %c0_37, %c0_38] : memref<6x1x16xf32, #tpu.memory_space<vmem>>, vector<1x1x16xf32>
    %41 = vector.shape_cast %40 : vector<1x1x16xf32> to vector<1x16xf32>
    %42 = vector.broadcast %41 : vector<1x16xf32> to vector<12x16xf32>
    %43 = arith.addf %39, %42 : vector<12x16xf32>
    %44 = vector.extract_strided_slice %36 {offsets = [0, 0], sizes = [6, 16], strides = [1, 1]} : vector<12x16xf32> to vector<6x16xf32>
    %45 = vector.extract_strided_slice %8 {offsets = [0, 0], sizes = [4, 16], strides = [1, 1]} : vector<8x16xf32> to vector<4x16xf32>
    %46 = vector.extract_strided_slice %22 {offsets = [0, 0], sizes = [4, 16], strides = [1, 1]} : vector<8x16xf32> to vector<4x16xf32>
    %cst_39 = arith.constant dense<0.000000e+00> : vector<6x4xf32>
    %47 = tpu.matmul %44, %45, %cst_39 {dimension_numbers = #tpu.dot_dimension_numbers<[1], [1], [0], [0], [0, 0, 1, 0], [], []>} : vector<6x16xf32>, vector<4x16xf32>, vector<6x4xf32> -> vector<6x4xf32>
    %cst_40 = arith.constant dense<0xFF800000> : vector<6xf32>
    %48 = vector.multi_reduction <maximumf>, %47, %cst_40 [1] : vector<6x4xf32> to vector<6xf32>
    %49 = vector.shape_cast %48 : vector<6xf32> to vector<6x1xf32>
    %50 = vector.broadcast %49 : vector<6x1xf32> to vector<6x4xf32>
    %51 = arith.subf %47, %50 : vector<6x4xf32>
    %52 = math.exp %51 : vector<6x4xf32>
    %cst_41 = arith.constant dense<0.000000e+00> : vector<6xf32>
    %53 = vector.multi_reduction <add>, %52, %cst_41 [1] : vector<6x4xf32> to vector<6xf32>
    %54 = vector.shape_cast %53 : vector<6xf32> to vector<6x1xf32>
    %55 = tpu.reciprocal %54 {approx = true} : vector<6x1xf32> -> vector<6x1xf32>
    %56 = vector.broadcast %55 : vector<6x1xf32> to vector<6x4xf32>
    %57 = arith.mulf %52, %56 : vector<6x4xf32>
    %cst_42 = arith.constant dense<0.000000e+00> : vector<6x16xf32>
    %58 = tpu.matmul %57, %46, %cst_42 {dimension_numbers = #tpu.dot_dimension_numbers<[1], [0], [0], [1], [0, 0, 1, 1], [], []>} : vector<6x4xf32>, vector<4x16xf32>, vector<6x16xf32> -> vector<6x16xf32>
    %59 = vector.extract_strided_slice %15 {offsets = [0, 0], sizes = [4, 16], strides = [1, 1]} : vector<8x16xf32> to vector<4x16xf32>
    %60 = vector.extract_strided_slice %29 {offsets = [0, 0], sizes = [6, 16], strides = [1, 1]} : vector<12x16xf32> to vector<6x16xf32>
    %61 = vector.extract_strided_slice %43 {offsets = [0, 0], sizes = [6, 16], strides = [1, 1]} : vector<12x16xf32> to vector<6x16xf32>
    %cst_43 = arith.constant dense<0.000000e+00> : vector<4x6xf32>
    %62 = tpu.matmul %59, %60, %cst_43 {dimension_numbers = #tpu.dot_dimension_numbers<[1], [1], [0], [0], [0, 0, 1, 0], [], []>} : vector<4x16xf32>, vector<6x16xf32>, vector<4x6xf32> -> vector<4x6xf32>
    %cst_44 = arith.constant dense<0xFF800000> : vector<4xf32>
    %63 = vector.multi_reduction <maximumf>, %62, %cst_44 [1] : vector<4x6xf32> to vector<4xf32>
    %64 = vector.shape_cast %63 : vector<4xf32> to vector<4x1xf32>
    %65 = vector.broadcast %64 : vector<4x1xf32> to vector<4x6xf32>
    %66 = arith.subf %62, %65 : vector<4x6xf32>
    %67 = math.exp %66 : vector<4x6xf32>
    %cst_45 = arith.constant dense<0.000000e+00> : vector<4xf32>
    %68 = vector.multi_reduction <add>, %67, %cst_45 [1] : vector<4x6xf32> to vector<4xf32>
    %69 = vector.shape_cast %68 : vector<4xf32> to vector<4x1xf32>
    %70 = tpu.reciprocal %69 {approx = true} : vector<4x1xf32> -> vector<4x1xf32>
    %71 = vector.broadcast %70 : vector<4x1xf32> to vector<4x6xf32>
    %72 = arith.mulf %67, %71 : vector<4x6xf32>
    %cst_46 = arith.constant dense<0.000000e+00> : vector<4x16xf32>
    %73 = tpu.matmul %72, %61, %cst_46 {dimension_numbers = #tpu.dot_dimension_numbers<[1], [0], [0], [1], [0, 0, 1, 1], [], []>} : vector<4x6xf32>, vector<6x16xf32>, vector<4x16xf32> -> vector<4x16xf32>
    %c0_47 = arith.constant 0 : index
    %c0_48 = arith.constant 0 : index
    %c0_49 = arith.constant 0 : index
    %74 = vector.load %arg5[%c0_47, %c0_48, %c0_49] : memref<2x10x16xf32, #tpu.memory_space<vmem>>, vector<1x6x16xf32>
    %75 = vector.shape_cast %74 : vector<1x6x16xf32> to vector<6x16xf32>
    %76 = vector.shape_cast %58 : vector<6x16xf32> to vector<1x6x16xf32>
    tpu.vector_store %arg5[%c0_47, %c0_48, %c0_49], %76 {strides = array<i32>} : memref<2x10x16xf32, #tpu.memory_space<vmem>>, vector<1x6x16xf32>,
    %c0_50 = arith.constant 0 : index
    %c6 = arith.constant 6 : index
    %c0_51 = arith.constant 0 : index
    %77 = vector.load %arg5[%c0_50, %c6, %c0_51] : memref<2x10x16xf32, #tpu.memory_space<vmem>>, vector<1x4x16xf32>
    %78 = vector.shape_cast %77 : vector<1x4x16xf32> to vector<4x16xf32>
    %79 = vector.shape_cast %73 : vector<4x16xf32> to vector<1x4x16xf32>
    tpu.vector_store %arg5[%c0_50, %c6, %c0_51], %79 {strides = array<i32>} : memref<2x10x16xf32, #tpu.memory_space<vmem>>, vector<1x4x16xf32>,
    %80 = vector.extract_strided_slice %36 {offsets = [6, 0], sizes = [6, 16], strides = [1, 1]} : vector<12x16xf32> to vector<6x16xf32>
    %81 = vector.extract_strided_slice %8 {offsets = [4, 0], sizes = [4, 16], strides = [1, 1]} : vector<8x16xf32> to vector<4x16xf32>
    %82 = vector.extract_strided_slice %22 {offsets = [4, 0], sizes = [4, 16], strides = [1, 1]} : vector<8x16xf32> to vector<4x16xf32>
    %cst_52 = arith.constant dense<0.000000e+00> : vector<6x4xf32>
    %83 = tpu.matmul %80, %81, %cst_52 {dimension_numbers = #tpu.dot_dimension_numbers<[1], [1], [0], [0], [0, 0, 1, 0], [], []>} : vector<6x16xf32>, vector<4x16xf32>, vector<6x4xf32> -> vector<6x4xf32>
    %cst_53 = arith.constant dense<0xFF800000> : vector<6xf32>
    %84 = vector.multi_reduction <maximumf>, %83, %cst_53 [1] : vector<6x4xf32> to vector<6xf32>
    %85 = vector.shape_cast %84 : vector<6xf32> to vector<6x1xf32>
    %86 = vector.broadcast %85 : vector<6x1xf32> to vector<6x4xf32>
    %87 = arith.subf %83, %86 : vector<6x4xf32>
    %88 = math.exp %87 : vector<6x4xf32>
    %cst_54 = arith.constant dense<0.000000e+00> : vector<6xf32>
    %89 = vector.multi_reduction <add>, %88, %cst_54 [1] : vector<6x4xf32> to vector<6xf32>
    %90 = vector.shape_cast %89 : vector<6xf32> to vector<6x1xf32>
    %91 = tpu.reciprocal %90 {approx = true} : vector<6x1xf32> -> vector<6x1xf32>
    %92 = vector.broadcast %91 : vector<6x1xf32> to vector<6x4xf32>
    %93 = arith.mulf %88, %92 : vector<6x4xf32>
    %cst_55 = arith.constant dense<0.000000e+00> : vector<6x16xf32>
    %94 = tpu.matmul %93, %82, %cst_55 {dimension_numbers = #tpu.dot_dimension_numbers<[1], [0], [0], [1], [0, 0, 1, 1], [], []>} : vector<6x4xf32>, vector<4x16xf32>, vector<6x16xf32> -> vector<6x16xf32>
    %95 = vector.extract_strided_slice %15 {offsets = [4, 0], sizes = [4, 16], strides = [1, 1]} : vector<8x16xf32> to vector<4x16xf32>
    %96 = vector.extract_strided_slice %29 {offsets = [6, 0], sizes = [6, 16], strides = [1, 1]} : vector<12x16xf32> to vector<6x16xf32>
    %97 = vector.extract_strided_slice %43 {offsets = [6, 0], sizes = [6, 16], strides = [1, 1]} : vector<12x16xf32> to vector<6x16xf32>
    %cst_56 = arith.constant dense<0.000000e+00> : vector<4x6xf32>
    %98 = tpu.matmul %95, %96, %cst_56 {dimension_numbers = #tpu.dot_dimension_numbers<[1], [1], [0], [0], [0, 0, 1, 0], [], []>} : vector<4x16xf32>, vector<6x16xf32>, vector<4x6xf32> -> vector<4x6xf32>
    %cst_57 = arith.constant dense<0xFF800000> : vector<4xf32>
    %99 = vector.multi_reduction <maximumf>, %98, %cst_57 [1] : vector<4x6xf32> to vector<4xf32>
    %100 = vector.shape_cast %99 : vector<4xf32> to vector<4x1xf32>
    %101 = vector.broadcast %100 : vector<4x1xf32> to vector<4x6xf32>
    %102 = arith.subf %98, %101 : vector<4x6xf32>
    %103 = math.exp %102 : vector<4x6xf32>
    %cst_58 = arith.constant dense<0.000000e+00> : vector<4xf32>
    %104 = vector.multi_reduction <add>, %103, %cst_58 [1] : vector<4x6xf32> to vector<4xf32>
    %105 = vector.shape_cast %104 : vector<4xf32> to vector<4x1xf32>
    %106 = tpu.reciprocal %105 {approx = true} : vector<4x1xf32> -> vector<4x1xf32>
    %107 = vector.broadcast %106 : vector<4x1xf32> to vector<4x6xf32>
    %108 = arith.mulf %103, %107 : vector<4x6xf32>
    %cst_59 = arith.constant dense<0.000000e+00> : vector<4x16xf32>
    %109 = tpu.matmul %108, %97, %cst_59 {dimension_numbers = #tpu.dot_dimension_numbers<[1], [0], [0], [1], [0, 0, 1, 1], [], []>} : vector<4x6xf32>, vector<6x16xf32>, vector<4x16xf32> -> vector<4x16xf32>
    %c1_60 = arith.constant 1 : index
    %c0_61 = arith.constant 0 : index
    %c0_62 = arith.constant 0 : index
    %110 = vector.load %arg5[%c1_60, %c0_61, %c0_62] : memref<2x10x16xf32, #tpu.memory_space<vmem>>, vector<1x6x16xf32>
    %111 = vector.shape_cast %110 : vector<1x6x16xf32> to vector<6x16xf32>
    %112 = vector.shape_cast %94 : vector<6x16xf32> to vector<1x6x16xf32>
    tpu.vector_store %arg5[%c1_60, %c0_61, %c0_62], %112 {strides = array<i32>} : memref<2x10x16xf32, #tpu.memory_space<vmem>>, vector<1x6x16xf32>,
    %c1_63 = arith.constant 1 : index
    %c6_64 = arith.constant 6 : index
    %c0_65 = arith.constant 0 : index
    %113 = vector.load %arg5[%c1_63, %c6_64, %c0_65] : memref<2x10x16xf32, #tpu.memory_space<vmem>>, vector<1x4x16xf32>
    %114 = vector.shape_cast %113 : vector<1x4x16xf32> to vector<4x16xf32>
    %115 = vector.shape_cast %109 : vector<4x16xf32> to vector<1x4x16xf32>
    tpu.vector_store %arg5[%c1_63, %c6_64, %c0_65], %115 {strides = array<i32>} : memref<2x10x16xf32, #tpu.memory_space<vmem>>, vector<1x4x16xf32>,
    return
  }
  func.func @transform_0(%arg0: i32) -> (i32, i32) {
    %c0_i32 = arith.constant 0 : i32
    %c0_i32_0 = arith.constant 0 : i32
    return %arg0, %c0_i32 : i32, i32
  }
  func.func @transform_1(%arg0: i32) -> (i32, i32) {
    %c0_i32 = arith.constant 0 : i32
    %c0_i32_0 = arith.constant 0 : i32
    return %arg0, %c0_i32 : i32, i32
  }
  func.func @transform_2(%arg0: i32) -> (i32, i32, i32) {
    %c0_i32 = arith.constant 0 : i32
    %c0_i32_0 = arith.constant 0 : i32
    %c0_i32_1 = arith.constant 0 : i32
    %c0_i32_2 = arith.constant 0 : i32
    return %c0_i32, %c0_i32_0, %c0_i32_1 : i32, i32, i32
  }
  func.func @transform_3(%arg0: i32) -> (i32, i32, i32) {
    %c0_i32 = arith.constant 0 : i32
    %c0_i32_0 = arith.constant 0 : i32
    %c0_i32_1 = arith.constant 0 : i32
    %c0_i32_2 = arith.constant 0 : i32
    return %c0_i32, %c0_i32_0, %c0_i32_1 : i32, i32, i32
  }
  func.func @transform_4(%arg0: i32) -> (i32, i32, i32) {
    %c0_i32 = arith.constant 0 : i32
    %c0_i32_0 = arith.constant 0 : i32
    %c0_i32_1 = arith.constant 0 : i32
    return %arg0, %c0_i32, %c0_i32_0 : i32, i32, i32
  }
}

</mosaic_0001>

<bundles_post_ra>
// kernel: tpu_custom_call.1
= control target key start
LH: loop header
LB: loop body
LE: loop exit
PB: predicated region body
PF: predicated region fallthrough
CT: control target
= control target key end

     0   :  { %9 = vsyncpa [#allocation3], 0  ;;  %s1663_s0 = inlined_call_operand.hbm [shape: f32[8,16], index: 0, kind: input, shape index: {}]   ;;  %s1664_s1 = inlined_call_operand.hbm [shape: f32[12,16], index: 1, kind: input, shape index: {}]   ;;  %s1665_s2 = inlined_call_operand.hbm [shape: f32[6,16,16], index: 2, kind: input, shape index: {}]   ;;  %s1666_s3 = inlined_call_operand.hbm [shape: f32[6,1,16], index: 3, kind: input, shape index: {}]   ;;  %s1667_s4 = inlined_call_operand.vmem [shape: f32[2,10,16], index: 4, kind: output, shape index: {}]  }
   0x1   :  { %10 = vsyncpa [#allocation5], 0 }
   0x2   :  { %11 = vsyncpa [#allocation8], 0  ;;  %s1528_s15 = smov [#allocation4]  }
   0x3   :  { %s27_s16 = sshll.u32 %s1528_s15, 4  ;;  %s28_s16 = int_to_ptr.vmem [resolvable:$true] %s27_s16 }
   0x4   :  { %s1450_s17 = scalar_lea.vmem %s28_s16, 256  ;;  %p1455_p1 = scmp.lt.s32.totalorder %s28_s16, %s28_s16 }
   0x5   :  { %p1451_p0 = scmp.ne.s32.totalorder %s28_s16, %s1450_s17  ;;  %p1456_p2 = scmp.lt.s32.totalorder %s1450_s17, %s1450_s17 }
   0x7   :  { %p1457_p3 = por %p1456_p2, %p1455_p1 }
   0x9   :  { %p1458_p4 = pnand %p1457_p3, %p1451_p0 }
   0xb   :  { %1461 = shalt.err (!%p1458_p4)
}
   0xc   :  { %s1529_s18 = smov 128   ;;  %s1530_s19 = smov 8  }
   0xd   :  { %33 = dma.hbm_to_vmem [thread:$0]  %s1664_s1, 256, %s28_s16, [#allocation5], %s1529_s18, %s1529_s18, %s1530_s19  }
   0xe   :  { %s1531_s22 = smov [#allocation2]   ;;  %s1532_s24 = smov [#allocation6]  }
   0xf   :  { %s18_s23 = sshll.u32 %s1531_s22, 4  ;;  %s39_s25 = sshll.u32 %s1532_s24, 4  ;;  %s19_s23 = int_to_ptr.vmem [resolvable:$true] %s18_s23  ;;  %s40_s25 = int_to_ptr.vmem [resolvable:$true] %s39_s25 }
  0x10   :  { %s1470_s26 = scalar_lea.vmem %s19_s23, 128  ;;  %p1475_p6 = scmp.lt.s32.totalorder %s19_s23, %s19_s23 }
  0x11   :  { %p1471_p5 = scmp.ne.s32.totalorder %s19_s23, %s1470_s26  ;;  %p1476_p7 = scmp.lt.s32.totalorder %s1470_s26, %s1470_s26 }
  0x13   :  { %p1477_p8 = por %p1476_p7, %p1475_p6 }
  0x15   :  { %p1478_p9 = pnand %p1477_p8, %p1471_p5 }
  0x17   :  { %1481 = shalt.err (!%p1478_p9)
}
  0x18   :  { %21 = dma.hbm_to_vmem [thread:$0]  %s1663_s0, 128, %s19_s23, [#allocation3]  }
  0x19   :  { %s1490_s29 = scalar_lea.vmem %s40_s25, 1536  ;;  %p1495_p11 = scmp.lt.s32.totalorder %s40_s25, %s40_s25 }
  0x1a   :  { %p1491_p10 = scmp.ne.s32.totalorder %s40_s25, %s1490_s29  ;;  %p1496_p12 = scmp.lt.s32.totalorder %s1490_s29, %s1490_s29 }
  0x1c   :  { %p1497_p13 = por %p1496_p12, %p1495_p11 }
  0x1e   :  { %p1498_p0 = pnand %p1497_p13, %p1491_p10 }
  0x20   :  { %1501 = shalt.err (!%p1498_p0)
}
  0x21   :  { %45 = dma.hbm_to_vmem [thread:$0]  %s1665_s2, 1536, %s40_s25, [#allocation5], %s1529_s18, %s1529_s18, %s1530_s19  }
  0x22   :  { %s1533_s5 = smov [#allocation7]  }
  0x23   :  { %s51_s6 = sshll.u32 %s1533_s5, 4  ;;  %s52_s6 = int_to_ptr.vmem [resolvable:$true] %s51_s6 }
  0x24   :  { %s1510_s7 = scalar_lea.vmem %s52_s6, 96  ;;  %p1515_p2 = scmp.lt.s32.totalorder %s52_s6, %s52_s6 }
  0x25   :  { %p1511_p1 = scmp.ne.s32.totalorder %s52_s6, %s1510_s7  ;;  %p1516_p3 = scmp.lt.s32.totalorder %s1510_s7, %s1510_s7 }
  0x27   :  { %p1517_p4 = por %p1516_p3, %p1515_p2 }
  0x29   :  { %p1518_p5 = pnand %p1517_p4, %p1511_p1 }
  0x2b   :  { %1521 = shalt.err (!%p1518_p5)
}
  0x2c   :  { %s1534_s0 = smov 16   ;;  %s1535_s8 = smov 1  }
  0x2d   :  { %57 = dma.hbm_to_vmem [thread:$0]  %s1666_s3, 96, %s52_s6, [#allocation8], %s1534_s0, %s1534_s0, %s1535_s8  }
  0x2e   :  { %1522 = dma.done.wait [#allocation3], 128  }
  0x2f   :  { %1523 = vsyncadd [#allocation3], 4294967168 }
  0x30   :  { %1524 = dma.done.wait [#allocation5], 1792  }
  0x31   :  { %1525 = vsyncadd [#allocation5], 4294965504 }
  0x32   :  { %1526 = dma.done.wait [#allocation8], 96  }
  0x33   :  { %1527 = vsyncadd [#allocation8], 4294967200  ;;  %v1536_v0 = vmov 0.0   ;;  %vm1537_vm0 = vmmov 0   ;;  %v74_v1 = vld [vmem:[#allocation6 + $0x8] sm:$0xff]  ;;  %v73_v2 = vld [vmem:[#allocation6] sm:$0xff] }
  0x34   :  { %1334 = vmatprep.subr.mxu0 %v1536_v0  ;;  %1338 = vmatprep.mubr.msk.f32.mxu0 %vm1537_vm0, %v1536_v0  ;;  %v70_v3 = vld [vmem:[#allocation2] sm:$0xff]  ;;  %vm82_vm1 = vcmask 130048   ;;  %v158_v4 = vld [vmem:[#allocation6 + $0x18] sm:$0xff]  ;;  %v157_v6 = vld [vmem:[#allocation6 + $0x10] sm:$0xff]  ;;  %vm674_vm2 = vcmask 1043456   ;;  %vm919_vm3 = vcmask 1041408  }
  0x35   :  { %1341 = vmatprep.subr.mxu1 %v1536_v0  ;;  %1345 = vmatprep.mubr.msk.f32.mxu1 %vm1537_vm0, %v1536_v0  ;;  %v239_v5 = vld [vmem:[#allocation6 + $0x28] sm:$0xff]  ;;  %v238_v7 = vld [vmem:[#allocation6 + $0x20] sm:$0xff]  ;;  %v320_v8 = vld [vmem:[#allocation6 + $0x38] sm:$0xff]  ;;  %vm658_vm4 = vcmask 29696   ;;  %vm824_vm5 = vcmask 44032   ;;  %vm670_vm6 = vcmask 31744  }
  0x36   :  { %1335 = vmatpush3.msra.mxu0 %v74_v1  ;;  %1342 = vmatpush3.msra.mxu1 %v158_v4  ;;  %v412_v9 = vld [vmem:[#allocation6 + $0x48] sm:$0xff]  ;;  %v319_v10 = vld [vmem:[#allocation6 + $0x30] sm:$0xff]  ;;  %v411_v12 = vld [vmem:[#allocation6 + $0x40] sm:$0xff]  ;;  %vm840_vm7 = vcmask 1045504   ;;  %vm836_vm8 = vcmask 48128   ;;  %vm914_vm9 = vcmask 128000  }
  0x37   :  { %1336 = vmatprep.subr.mxu0 %v1536_v0  ;;  %1343 = vmatprep.subr.mxu1 %v1536_v0  ;;  %v71_v11 = vld [vmem:[#allocation4] sm:$0xff]  ;;  %v72_v13 = vld [vmem:[#allocation4 + $0x8] sm:$0xf]  ;;  %v1264_v16 = vld [vmem:[#allocation7] ss:$0 sm:$0xff]  ;;  %vm916_vm10 = vcmask 125952  }
  0x38   :  { %1337 = vmatpush3.msra.mxu0 %v73_v2  ;;  %1344 = vmatpush3.msra.mxu1 %v157_v6  ;;  %v498_v14 = vld [vmem:[#allocation6 + $0x58] sm:$0xff]  ;;  %v497_v15 = vld [vmem:[#allocation6 + $0x50] sm:$0xff]  ;;  %v1268_v21 = vld [vmem:[#allocation7 + $0x2] ss:$0 sm:$0xff] }
  0x39   :  { %1339 = vmatmul.mubr.msk.f32.vlgmr.msra.gmra.mxu0 %vm82_vm1, %v70_v3  ;;  %1348 = vmatprep.subr.mxu0 %v1536_v0  ;;  %v1270_v27 = vld [vmem:[#allocation7 + $0x3] ss:$0 sm:$0xff]  ;;  %v1273_v30 = vld [vmem:[#allocation7 + $0x4] ss:$0 sm:$0xff]  ;;  %v1266_v34 = vld [vmem:[#allocation7 + $0x1] ss:$0 sm:$0xff] }
  0x3a   :  { %1349 = vmatpush3.msra.mxu0 %v239_v5  ;;  %1346 = vmatmul.mubr.msk.f32.vlgmr.msra.gmra.mxu1 %vm82_vm1, %v70_v3 }
  0x3b   :  { %1350 = vmatprep.subr.mxu0 %v1536_v0  ;;  %1352 = vmatprep.mubr.msk.f32.mxu0 %vm1537_vm0, %v1536_v0 }
  0x3c   :  { %1351 = vmatpush3.msra.mxu0 %v238_v7  ;;  %1355 = vmatprep.subr.mxu1 %v320_v8 }
  0x3d   :  { %1353 = vmatmul.mubr.msk.f32.vlgmr.msra.gmra.mxu0 %vm82_vm1, %v70_v3  ;;  %1356 = vmatpush3.msra.mxu1 %v320_v8 }
  0x3e   :  { %1362 = vmatprep.subr.mxu0 %v412_v9  ;;  %1357 = vmatprep.subr.mxu1 %v319_v10 }
  0x3f   :  { %1363 = vmatpush3.msra.mxu0 %v412_v9  ;;  %1358 = vmatpush3.msra.mxu1 %v319_v10 }
  0x40   :  { %1359 = vmatprep.mubr.msk.f32.mxu1 %vm82_vm1, %v71_v11  ;;  %1364 = vmatprep.subr.mxu0 %v411_v12 }
  0x41   :  { %1360 = vmatmul.mubr.msk.f32.vlgmr.msra.gmra.mxu1 %vm82_vm1, %v72_v13  ;;  %1365 = vmatpush3.msra.mxu0 %v411_v12 }
  0x42   :  { %1366 = vmatprep.mubr.msk.f32.mxu0 %vm82_vm1, %v71_v11  ;;  %1376 = vmatprep.subr.mxu0 %v1536_v0 }
  0x43   :  { %1367 = vmatmul.mubr.msk.f32.vlgmr.msra.gmra.mxu0 %vm82_vm1, %v72_v13  ;;  %1373 = vmatprep.mubr.msk.f32.mxu1 %vm82_vm1, %v71_v11 }
  0x44   :  { %1378 = vmatprep.mubr.msk.f32.mxu0 %vm1537_vm0, %v1536_v0  ;;  %1369 = vmatprep.subr.mxu1 %v498_v14 }
  0x45   :  { %1370 = vmatpush3.msra.mxu1 %v498_v14 }
  0x46   :  { %1371 = vmatprep.subr.mxu1 %v497_v15 }
  0x47   :  { %1372 = vmatpush3.msra.mxu1 %v497_v15 }
  0x48   :  { %1381 = vmatprep.subr.mxu1 %v1536_v0  ;;  %1374 = vmatmul.mubr.msk.f32.vlgmr.msra.gmra.mxu1 %vm82_vm1, %v72_v13 }
  0x49   :  { %1383 = vmatprep.mubr.msk.f32.mxu1 %vm1537_vm0, %v1536_v0 }
  0xf9   :  { %v152_v17 = vpop.f32.mrf.mxu0 }
  0xfa   :  { %v153_v18 = vadd.f32 %v1264_v16, %v152_v17  ;;  %v233_v20 = vpop.f32.mrf.mxu1 }
  0xfb   :  { %v1340_v19 = vpop.f32.mrf.mxu0  ;;  %v234_v37 = vadd.f32 %v1266_v34, %v233_v20 }
  0xfc   :  { %1377 = vmatpush3.xpose.msk.msra.mxu0 %vm82_vm1, %v153_v18  ;;  %v1347_v23 = vpop.f32.mrf.mxu1  ;;  %v923_v38 = vrot.slane %v153_v18, 4  ;;  %v1276_v19 = vld [vmem:[#allocation7 + $0x5] ss:$0 sm:$0xff] }
  0xfd   :  { %v314_v22 = vpop.f32.mrf.mxu0  ;;  %1386 = vmatprep.subr.mxu0 %v1536_v0  ;;  %v1085_v45 = vrot.slane %v234_v37, 4 }
  0xfe   :  { %v1604_v24 = vadd.f32 %v1268_v21, %v314_v22 }
  0xff   :  { %v1354_v25 = vpop.f32.mrf.mxu0 }
 0x100   :  { %1382 = vmatpush3.msk.msra.mxu1 %vm674_vm2, %v1604_v24 }
 0x101   :  { %v1361_v26 = vpop.f32.mrf.mxu1  ;;  %1391 = vmatprep.subr.mxu1 %v1536_v0 }
 0x102   :  { %v407_v35 = vadd.f32 %v1361_v26, %v1270_v27 }
 0x103   :  { %v1368_v28 = vpop.f32.mrf.mxu0  ;;  %v401_v29 = vpop.f32.mrf.mxu1 }
 0x104   :  { %v402_v31 = vadd.f32 %v1270_v27, %v401_v29  ;;  %v493_v36 = vadd.f32 %v1368_v28, %v1273_v30  ;;  %v1088_v40 = vrot.slane %v407_v35, 6  ;;  %v1009_v29 = vrot.slane %v1604_v24, 4 }
 0x105   :  { %v487_v32 = vpop.f32.mrf.mxu0 }
 0x106   :  { %v488_v33 = vadd.f32 %v1273_v30, %v487_v32  ;;  %v1087_v41 = vrot.slane %v402_v31, 6  ;;  %v921_v42 = vrot.slane %v493_v36, 6 }
 0x108   :  { %1379 = vmatmul.mubr.msk.f32.vlgmr.msra.gmra.mxu0 %vm82_vm1, %v488_v33  ;;  %v920_v39 = vrot.slane %v488_v33, 6  ;;  %v1089_v44 = vsel %vm919_vm3, %v1087_v41, %v1088_v40  ;;  %v1375_v17 = vpop.f32.mrf.mxu1 }
 0x109   :  { %1387 = vmatpush3.xpose.msk.msra.mxu0 %vm82_vm1, %v402_v31  ;;  %1388 = vmatprep.mubr.msk.f32.mxu0 %vm1537_vm0, %v1536_v0  ;;  %v579_v26 = vadd.f32 %v1375_v17, %v1276_v19 }
 0x10a   :  { %1396 = vmatprep.subr.mxu0 %v1536_v0  ;;  %v922_v43 = vsel %vm919_vm3, %v920_v39, %v921_v42  ;;  %v573_v20 = vpop.f32.mrf.mxu1 }
 0x10b   :  { %v574_v23 = vadd.f32 %v1276_v19, %v573_v20  ;;  %v1177_v30 = vrot.slane %v579_v26, 6 }
 0x10c   :  { %1389 = vmatmul.mubr.msk.f32.vlgmr.msra.gmra.mxu0 %vm82_vm1, %v234_v37 }
 0x10d   :  { %1397 = vmatpush3.xpose.msk.msra.mxu0 %vm82_vm1, %v923_v38  ;;  %1398 = vmatprep.mubr.msk.f32.mxu0 %vm1537_vm0, %v1536_v0  ;;  %v1176_v31 = vrot.slane %v574_v23, 6 }
 0x10e   :  { %1406 = vmatprep.subr.mxu0 %v1536_v0 }
 0x10f   :  { %v1178_v34 = vsel %vm919_vm3, %v1176_v31, %v1177_v30 }
 0x110   :  { %1399 = vmatmul.mubr.msk.f32.vlgmr.msra.gmra.mxu0 %vm82_vm1, %v922_v43 }
 0x111   :  { %1407 = vmatpush3.xpose.msk.msra.mxu0 %vm82_vm1, %v1089_v44  ;;  %1408 = vmatprep.mubr.msk.f32.mxu0 %vm1537_vm0, %v1536_v0 }
 0x114   :  { %1409 = vmatmul.mubr.msk.f32.vlgmr.msra.gmra.mxu0 %vm82_vm1, %v1085_v45 }
 0x1c8   :  { %v654_v46 = vpop.f32.mrf.mxu0 }
 0x1c9   :  { %v659_v47 = vsel %vm658_vm4, %v654_v46, -inf }
 0x1ca   :  { %660 = vmax.xlane.f32.xlu0 %v659_v47  ;;  %v1380_v48 = vpop.f32.mrf.mxu0 }
 0x1cc   :  { %v820_v49 = vpop.f32.mrf.mxu0 }
 0x1cd   :  { %v825_v50 = vsel %vm824_vm5, %v820_v49, -inf }
 0x1ce   :  { %826 = vmax.xlane.f32.xlu0 %v825_v50  ;;  %v1390_v51 = vpop.f32.mrf.mxu0 }
 0x1d0   :  { %v994_v52 = vpop.f32.mrf.mxu0 }
 0x1d1   :  { %v998_v53 = vsel %vm658_vm4, %v994_v52, -inf }
 0x1d2   :  { %999 = vmax.xlane.f32.xlu1 %v998_v53  ;;  %v1400_v54 = vpop.f32.mrf.mxu0 }
 0x1d4   :  { %v1160_v55 = vpop.f32.mrf.mxu0 }
 0x1d5   :  { %v1164_v56 = vsel %vm824_vm5, %v1160_v55, -inf }
 0x1d6   :  { %1165 = vmax.xlane.f32.xlu1 %v1164_v56  ;;  %v1410_v57 = vpop.f32.mrf.mxu0 }
 0x253   :  { %v661_v58 = vpop.xlane.xlu0 %660 }
 0x254   :  { %v662_v59 = vsub.f32 %v654_v46, %v661_v58 }
 0x256   :  { %v663_v60 = vmul.f32 1.442695, %v662_v59 }
 0x257   :  { %v827_v61 = vpop.xlane.xlu0 %826 }
 0x258   :  { %1426 = vpow2.f32 %v663_v60  ;;  %v828_v62 = vsub.f32 %v820_v49, %v827_v61 }
 0x25a   :  { %v829_v63 = vmul.f32 1.442695, %v828_v62 }
 0x25b   :  { %v1000_v1 = vpop.xlane.xlu1 %999 }
 0x25c   :  { %1428 = vpow2.f32 %v829_v63  ;;  %v1001_v2 = vsub.f32 %v994_v52, %v1000_v1 }
 0x25e   :  { %v1002_v3 = vmul.f32 1.442695, %v1001_v2 }
 0x25f   :  { %v1166_v4 = vpop.xlane.xlu1 %1165 }
 0x260   :  { %1430 = vpow2.f32 %v1002_v3  ;;  %v1167_v5 = vsub.f32 %v1160_v55, %v1166_v4 }
 0x262   :  { %v1168_v6 = vmul.f32 1.442695, %v1167_v5 }
 0x264   :  { %1432 = vpow2.f32 %v1168_v6 }
 0x265   :  { %v1427_v7 = vpop.eup %1426 }
 0x266   :  { %v665_v8 = vsel %vm658_vm4, %v1427_v7, 0.0 }
 0x267   :  { %666 = vadd.xlane.f32.xlu0 %v665_v8 }
 0x269   :  { %v1429_v9 = vpop.eup %1428 }
 0x26a   :  { %v831_v10 = vsel %vm824_vm5, %v1429_v9, 0.0 }
 0x26b   :  { %832 = vadd.xlane.f32.xlu1 %v831_v10 }
 0x26d   :  { %v1431_v11 = vpop.eup %1430 }
 0x26e   :  { %v1004_v12 = vsel %vm658_vm4, %v1431_v11, 0.0 }
 0x26f   :  { %1005 = vadd.xlane.f32.xlu0 %v1004_v12 }
 0x271   :  { %v1433_v13 = vpop.eup %1432 }
 0x272   :  { %v1170_v14 = vsel %vm824_vm5, %v1433_v13, 0.0 }
 0x273   :  { %1171 = vadd.xlane.f32.xlu1 %v1170_v14 }
 0x2f0   :  { %v667_v15 = vpop.xlane.xlu0 %666 }
 0x2f1   :  { %1434 = vrcp.f32 %v667_v15 }
 0x2f4   :  { %v833_v16 = vpop.xlane.xlu1 %832 }
 0x2f5   :  { %1436 = vrcp.f32 %v833_v16 }
 0x2f8   :  { %v1006_v18 = vpop.xlane.xlu0 %1005 }
 0x2f9   :  { %1438 = vrcp.f32 %v1006_v18 }
 0x2fc   :  { %v1172_v21 = vpop.xlane.xlu1 %1171 }
 0x2fd   :  { %1440 = vrcp.f32 %v1172_v21 }
 0x2fe   :  { %v1435_v22 = vpop.eup %1434 }
 0x2ff   :  { %v669_v25 = vmul.f32 %v1435_v22, %v1427_v7 }
 0x301   :  { %1384 = vmatmul.mubr.msk.f32.vlgmr.msra.gmra.mxu1 %vm670_vm6, %v669_v25 }
 0x302   :  { %v1437_v27 = vpop.eup %1436  ;;  %1392 = vmatpush3.msk.msra.mxu1 %vm840_vm7, %v574_v23  ;;  %1393 = vmatprep.mubr.msk.f32.mxu1 %vm1537_vm0, %v1536_v0 }
 0x303   :  { %1401 = vmatprep.subr.mxu1 %v1536_v0  ;;  %v835_v28 = vmul.f32 %v1437_v27, %v1429_v9 }
 0x305   :  { %1394 = vmatmul.mubr.msk.f32.vlgmr.msra.gmra.mxu1 %vm836_vm8, %v835_v28 }
 0x306   :  { %v1439_v32 = vpop.eup %1438  ;;  %1402 = vmatpush3.msk.msra.mxu1 %vm674_vm2, %v1009_v29  ;;  %1403 = vmatprep.mubr.msk.f32.mxu1 %vm1537_vm0, %v1536_v0 }
 0x307   :  { %1411 = vmatprep.subr.mxu1 %v1536_v0  ;;  %v1008_v33 = vmul.f32 %v1439_v32, %v1431_v11 }
 0x309   :  { %1404 = vmatmul.mubr.msk.f32.vlgmr.msra.gmra.mxu1 %vm670_vm6, %v1008_v33 }
 0x30a   :  { %v1441_v35 = vpop.eup %1440  ;;  %1412 = vmatpush3.msk.msra.mxu1 %vm840_vm7, %v1178_v34  ;;  %1413 = vmatprep.mubr.msk.f32.mxu1 %vm1537_vm0, %v1536_v0 }
 0x30b   :  { %v1174_v24 = vmul.f32 %v1441_v35, %v1433_v13 }
 0x30d   :  { %1414 = vmatmul.mubr.msk.f32.vlgmr.msra.gmra.mxu1 %vm836_vm8, %v1174_v24 }
 0x3c1   :  { %v744_v36 = vpop.f32.mrf.mxu1 }
 0x3c2   :  { %915 = vst.msk [vmem:[%s1667_s4] sm:$0x3f] %vm914_vm9, %v744_v36 }
 0x3c3   :  { %v1385_v37 = vpop.f32.mrf.mxu1 }
 0x3c5   :  { %v910_v38 = vpop.f32.mrf.mxu1 }
 0x3c6   :  { %917 = vst.msk [vmem:[%s1667_s4 + $0x6] sm:$0xf] %vm916_vm10, %v910_v38 }
 0x3c7   :  { %v1395_v39 = vpop.f32.mrf.mxu1 }
 0x3c9   :  { %v1081_v40 = vpop.f32.mrf.mxu1 }
 0x3ca   :  { %1295 = vst.msk [vmem:[%s1667_s4 + $0x10] sm:$0x3f] %vm914_vm9, %v1081_v40 }
 0x3cb   :  { %v1405_v0 = vpop.f32.mrf.mxu1 }
 0x3cd   :  { %v1250_v41 = vpop.f32.mrf.mxu1 }
 0x3ce   :  { %1296 = vst.msk [vmem:[%s1667_s4 + $0x16] sm:$0xf] %vm916_vm10, %v1250_v41 }
 0x3cf   :  { %v1415_v42 = vpop.f32.mrf.mxu1 }
 0x3d0   :  { %1261 = vsyncpa [#allocation3], 1 }
 0x3d1   :  { %1262 = vsyncpa [#allocation5], 1 }
 0x3d2   :  { %1263 = vsyncpa [#allocation8], 1 }

</bundles_post_ra>
